<compile_context>
chip_gen: v7x
topology: tpu7x:2x2x1
jax: 0.10.0
libtpu: 0.0.40
codegen_flags: <defaults>
</compile_context>

<pallas_src>
import jax
import jax.numpy as jnp
from jax.experimental import pallas as pl
from jax.experimental.pallas import tpu as pltpu


# ----------------------------------------------------------------------------
# Kernel: one grid step = (one batch tile, one lookback timestep).
# ----------------------------------------------------------------------------
def _fused_forward_kernel(img_ref, xt_ref, yl_ref,
                          w1_ref, b1_ref, wt_ref, bt_ref,
                          wimg_ref, wt2v_ref, wyl_ref, bfc_ref,
                          wh_ref, bh_ref,
                          out_ref, acc_ref):
    l = pl.program_id(1)
    n_l = pl.num_programs(1)

    # --- init (once per batch tile): fc bias + yl contribution --------------
    @pl.when(l == 0)
    def _():
        acc_ref[...] = bfc_ref[...] + jnp.dot(
            yl_ref[...], wyl_ref[...], preferred_element_type=jnp.float32)

    # --- per-timestep image features (stand-in backbone) --------------------
    img = img_ref[...]                                   # (Bt, C, H*W) bf16
    inv_hw = 1.0 / img.shape[-1]
    pooled = jnp.sum(img.astype(jnp.float32), axis=-1) * inv_hw   # (Bt, C) f32
    h = jnp.dot(pooled.astype(jnp.bfloat16), w1_ref[...],
                preferred_element_type=jnp.float32) + b1_ref[...]
    h = jnp.maximum(h, 0.0)                              # (Bt, 1024) f32
    # w_img2 / b_img2 were folded into wimg_ref / bfc_ref on the host, so this
    # single matmul is the whole per-timestep fc_linear image contribution.
    acc_ref[...] += jnp.dot(h.astype(jnp.bfloat16), wimg_ref[...],
                            preferred_element_type=jnp.float32)

    # --- Time2Vec of xt[:, l] : f32 on the VPU (no MXU for the 3x3 map) -----
    xt_l = xt_ref[...]                                   # (Bt, 3) f32
    wt = wt_ref[...]                                     # (3, 3)  f32
    lin = (bt_ref[...]
           + xt_l[:, 0:1] * wt[0:1, :]
           + xt_l[:, 1:2] * wt[1:2, :]
           + xt_l[:, 2:3] * wt[2:3, :])                  # (Bt, 3) f32
    col = jax.lax.broadcasted_iota(jnp.int32, lin.shape, 1)
    t2v = jnp.where(col == 0, lin, jnp.sin(lin))         # sin -> EUP slot
    acc_ref[...] += jnp.dot(t2v, wt2v_ref[...],
                            preferred_element_type=jnp.float32)

    # --- finalize: ReLU + all H forecast heads as one (hidden, H) matmul ----
    @pl.when(l == n_l - 1)
    def _():
        hid = jnp.maximum(acc_ref[...], 0.0)             # self.relu
        out_ref[...] = jnp.dot(hid, wh_ref[...],
                               preferred_element_type=jnp.float32) + bh_ref[...]


def _round_up(x, m):
    return ((x + m - 1) // m) * m


def _const_spec(shape):
    zeros = (0,) * len(shape)
    return pl.BlockSpec(shape, lambda b, l: zeros)


def resnet_forward(kparams, yl, x_images, xt):
    B, L, C, Hi, Wi = x_images.shape
    HW = Hi * Wi
    feat_hidden = kparams["w_img1"].shape[1]
    hidden = kparams["b_fc"].shape[-1]
    H_fore = kparams["w_heads"].shape[1]

    # Batch tile: at least 8 (full sublanes / better MXU occupancy), at most
    # 128; batch padded with zeros up to a multiple of the tile.
    block_b = min(max(_round_up(B, 8), 8), 128)
    B_pad = _round_up(B, block_b)

    # Host-side prep: images stored bf16 (halves HBM traffic of the only large
    # operand); everything else is tiny contiguous reshapes / a (L,B,3) transpose.
    imgs = x_images.astype(jnp.bfloat16).reshape(B, L, C, HW)
    if B_pad != B:
        imgs = jnp.pad(imgs, ((0, B_pad - B), (0, 0), (0, 0), (0, 0)))
        yl = jnp.pad(yl, ((0, B_pad - B), (0, 0), (0, 0)))
        xt = jnp.pad(xt, ((0, B_pad - B), (0, 0), (0, 0)))
    xts = jnp.transpose(xt, (1, 0, 2))                    # (L, B_pad, 3)
    yl2d = yl.reshape(B_pad, -1)                          # yl.view(B, -1)

    inputs = (imgs, xts, yl2d,
              kparams["w_img1"], kparams["b_img1"],
              kparams["w_t2v"], kparams["b_t2v"],
              kparams["w_fc_img"], kparams["w_fc_t2v"],
              kparams["w_fc_yl"], kparams["b_fc"],
              kparams["w_heads"], kparams["b_heads"])

    in_specs = [
        # Only large operand: streamed per (batch tile, timestep), bf16.
        pl.BlockSpec((block_b, None, C, HW), lambda b, l: (b, l, 0, 0)),
        # Per-timestep time features / fc weights (tiny, streamed with l).
        pl.BlockSpec((None, block_b, 3), lambda b, l: (l, b, 0)),
        pl.BlockSpec((block_b, L), lambda b, l: (b, 0)),
        _const_spec((C, feat_hidden)),                    # w_img1
        _const_spec((1, feat_hidden)),                    # b_img1
        _const_spec((3, 3)),                              # w_t2v
        _const_spec((1, 3)),                              # b_t2v
        pl.BlockSpec((None, feat_hidden, hidden), lambda b, l: (l, 0, 0)),
        pl.BlockSpec((None, 3, hidden), lambda b, l: (l, 0, 0)),
        _const_spec((L, hidden)),                         # w_fc_yl
        _const_spec((1, hidden)),                         # b_fc (folded)
        _const_spec((hidden, H_fore)),                    # w_heads
        _const_spec((1, H_fore)),                         # b_heads
    ]
    out_specs = pl.BlockSpec((block_b, H_fore), lambda b, l: (b, 0))

    # VMEM budget: 2x double-buffered image block + 2x per-l fc weight block +
    # resident weights + margin; capped at 48 MiB so it stays safe on v7x
    # (64 MiB physical) while still allowing larger blocks on v5e/v6e.
    img_blk = block_b * C * HW * 2
    wimg_blk = feat_hidden * hidden * 2
    need = 4 * img_blk + 4 * wimg_blk + (4 << 20)
    vmem_limit = int(min(max(need, 16 << 20), 48 << 20))

    out = pl.pallas_call(
        _fused_forward_kernel,
        out_shape=jax.ShapeDtypeStruct((B_pad, H_fore), jnp.float32),
        grid_spec=pltpu.PrefetchScalarGridSpec(
            num_scalar_prefetch=0,
            grid=(B_pad // block_b, L),
            in_specs=in_specs,
            out_specs=out_specs,
            scratch_shapes=[pltpu.VMEM((block_b, hidden), jnp.float32)]),
        compiler_params=pltpu.CompilerParams(
            dimension_semantics=("parallel", "arbitrary"),
            vmem_limit_bytes=vmem_limit),
    )(*inputs)

    # torch.cat([head_i(x).unsqueeze(-1) for i], dim=1) -> (B, H, 1)
    return out[:B, :, None]


# ----------------------------------------------------------------------------
# Parameters (raw f32, mirroring the PyTorch module) + one-time host repack.
# ----------------------------------------------------------------------------
def init_params(key, C, output_dim, hidden_dim, L, H_fore, t2v_dim=3):
    feat_hidden = 1024                                    # ResNetRegr(1024, ...)
    d_concat = output_dim * L + L + t2v_dim * L           # fc_linear in_features
    ks = jax.random.split(key, 6)
    n = lambda k, shape, scale: jax.random.normal(k, shape, jnp.float32) * scale
    return dict(
        w_img1=n(ks[0], (C, feat_hidden), 0.1),
        b_img1=jnp.zeros((1, feat_hidden), jnp.float32),
        w_img2=n(ks[1], (feat_hidden, output_dim), 0.03),
        b_img2=jnp.zeros((1, output_dim), jnp.float32),
        w_t2v=n(ks[2], (t2v_dim, t2v_dim), 0.5),
        b_t2v=n(ks[3], (1, t2v_dim), 0.1),
        w_fc=n(ks[4], (d_concat, hidden_dim), 0.1),
        b_fc=jnp.zeros((1, hidden_dim), jnp.float32),
        w_heads=n(ks[5], (hidden_dim, H_fore), 0.1),
        b_heads=jnp.zeros((1, H_fore), jnp.float32),
    )


def prepare_params(params, L, output_dim, t2v_dim=3):
    """One-time host-side repack:
       * split fc_linear rows by input source (no flatten/concat in kernel);
       * fold w_img2/b_img2 into the per-timestep fc weight/bias
         ((h@w2+b2)@wff[l] == h@(w2@wff[l]) + b2@wff[l]);
       * store the two big matmul operands in bf16 (f32 MXU accumulation)."""
    D, T = output_dim, t2v_dim
    step = D + T
    w_fc = params["w_fc"]
    w_step = w_fc[: L * step].reshape(L, step, -1)        # (L, D+T, hidden)
    w_fc_feat = w_step[:, :D, :]                          # (L, D, hidden)
    w_fc_t2v = w_step[:, D:, :]                           # (L, T, hidden)
    w_fc_yl = w_fc[L * step:]                             # (L, hidden)

    w_fc_img = jnp.einsum("kd,ldh->lkh", params["w_img2"], w_fc_feat)
    b_fc_fold = params["b_fc"] + jnp.einsum("od,ldh->oh", params["b_img2"],
                                            w_fc_feat)
    return dict(
        w_img1=params["w_img1"].astype(jnp.bfloat16),
        b_img1=params["b_img1"],
        w_t2v=params["w_t2v"],                            # f32 (VPU path)
        b_t2v=params["b_t2v"],
        w_fc_img=w_fc_img.astype(jnp.bfloat16),           # (L, 1024, hidden)
        w_fc_t2v=w_fc_t2v,                                # (L, 3, hidden) f32
        w_fc_yl=w_fc_yl,                                  # (L, hidden)    f32
        b_fc=b_fc_fold,
        w_heads=params["w_heads"], b_heads=params["b_heads"],
    )


if __name__ == "__main__":
    key = jax.random.PRNGKey(0)
    B, L, H_fore = 2, 3, 4                 # batch, lookback length, horizon
    C, Hi, Wi = 3, 16, 16                  # image channels / spatial
    output_dim, hidden_dim = 8, 32

    k1, k2, k3, k4 = jax.random.split(key, 4)
    yl = jax.random.normal(k1, (B, L, 1), jnp.float32)
    x_images = jax.random.normal(k2, (B, L, C, Hi, Wi), jnp.float32)
    xt = jax.random.normal(k3, (B, L, 3), jnp.float32)

    params = init_params(k4, C, output_dim, hidden_dim, L, H_fore)
    kparams = prepare_params(params, L, output_dim)

    fwd = jax.jit(resnet_forward)
    out = fwd(kparams, yl, x_images, xt)
    out = jax.block_until_ready(out)
    assert out.shape == (B, H_fore, 1), out.shape
    assert bool(jnp.all(jnp.isfinite(out)))
    print("KERNEL_OK")
</pallas_src>

<mosaic_0001>
module attributes {stable_mosaic.version = 11 : i64} {
  func.func @_fused_forward_kernel(%arg0: i32, %arg1: i32, %arg2: memref<8x1x3x256xbf16, #tpu.memory_space<vmem>>, %arg3: memref<1x8x3xf32, #tpu.memory_space<vmem>>, %arg4: memref<8x3xf32, #tpu.memory_space<vmem>>, %arg5: memref<3x1024xbf16, #tpu.memory_space<vmem>>, %arg6: memref<1x1024xf32, #tpu.memory_space<vmem>>, %arg7: memref<3x3xf32, #tpu.memory_space<vmem>>, %arg8: memref<1x3xf32, #tpu.memory_space<vmem>>, %arg9: memref<1x1024x32xbf16, #tpu.memory_space<vmem>>, %arg10: memref<1x3x32xf32, #tpu.memory_space<vmem>>, %arg11: memref<3x32xf32, #tpu.memory_space<vmem>>, %arg12: memref<1x32xf32, #tpu.memory_space<vmem>>, %arg13: memref<32x4xf32, #tpu.memory_space<vmem>>, %arg14: memref<1x4xf32, #tpu.memory_space<vmem>>, %arg15: memref<8x4xf32, #tpu.memory_space<vmem>>, %arg16: memref<8x32xf32, #tpu.memory_space<vmem>>) attributes {dimension_semantics = [#tpu.dimension_semantics<parallel>, #tpu.dimension_semantics<arbitrary>], iteration_bounds = array<i64: 1, 3>, scalar_prefetch = 0 : i64, scratch_operands = 1 : i64, tpu.core_type = #tpu.core_type<tc>, window_params = [{transform_indices = @transform_0, window_bounds = array<i64: 8, 1, 3, 256>}, {transform_indices = @transform_1, window_bounds = array<i64: 1, 8, 3>}, {transform_indices = @transform_2, window_bounds = array<i64: 8, 3>}, {pipeline_mode = #tpu.pipeline_mode<synchronous>, transform_indices = @transform_3, window_bounds = array<i64: 3, 1024>}, {pipeline_mode = #tpu.pipeline_mode<synchronous>, transform_indices = @transform_4, window_bounds = array<i64: 1, 1024>}, {pipeline_mode = #tpu.pipeline_mode<synchronous>, transform_indices = @transform_5, window_bounds = array<i64: 3, 3>}, {pipeline_mode = #tpu.pipeline_mode<synchronous>, transform_indices = @transform_6, window_bounds = array<i64: 1, 3>}, {transform_indices = @transform_7, window_bounds = array<i64: 1, 1024, 32>}, {transform_indices = @transform_8, window_bounds = array<i64: 1, 3, 32>}, {pipeline_mode = #tpu.pipeline_mode<synchronous>, transform_indices = @transform_9, window_bounds = array<i64: 3, 32>}, {pipeline_mode = #tpu.pipeline_mode<synchronous>, transform_indices = @transform_10, window_bounds = array<i64: 1, 32>}, {pipeline_mode = #tpu.pipeline_mode<synchronous>, transform_indices = @transform_11, window_bounds = array<i64: 32, 4>}, {pipeline_mode = #tpu.pipeline_mode<synchronous>, transform_indices = @transform_12, window_bounds = array<i64: 1, 4>}, {transform_indices = @transform_13, window_bounds = array<i64: 8, 4>}]} {
    %c0_i32 = arith.constant 0 : i32
    %0 = arith.cmpi eq, %arg1, %c0_i32 : i32
    %1 = arith.extui %0 : i1 to i32
    %c0_i32_0 = arith.constant 0 : i32
    %2 = arith.cmpi ne, %1, %c0_i32_0 : i32
    scf.if %2 {
      %c0_36 = arith.constant 0 : index
      %c0_37 = arith.constant 0 : index
      %61 = vector.load %arg12[%c0_36, %c0_37] : memref<1x32xf32, #tpu.memory_space<vmem>>, vector<1x32xf32>
      %c0_38 = arith.constant 0 : index
      %c0_39 = arith.constant 0 : index
      %62 = vector.load %arg4[%c0_38, %c0_39] : memref<8x3xf32, #tpu.memory_space<vmem>>, vector<8x3xf32>
      %c0_40 = arith.constant 0 : index
      %c0_41 = arith.constant 0 : index
      %63 = vector.load %arg11[%c0_40, %c0_41] : memref<3x32xf32, #tpu.memory_space<vmem>>, vector<3x32xf32>
      %cst_42 = arith.constant dense<0.000000e+00> : vector<8x32xf32>
      %64 = tpu.matmul %62, %63, %cst_42 {dimension_numbers = #tpu.dot_dimension_numbers<[1], [0], [0], [1], [0, 0, 1, 1], [], []>} : vector<8x3xf32>, vector<3x32xf32>, vector<8x32xf32> -> vector<8x32xf32>
      %65 = vector.broadcast %61 : vector<1x32xf32> to vector<8x32xf32>
      %66 = arith.addf %65, %64 : vector<8x32xf32>
      %c0_43 = arith.constant 0 : index
      %c0_44 = arith.constant 0 : index
      %67 = vector.load %arg16[%c0_43, %c0_44] : memref<8x32xf32, #tpu.memory_space<vmem>>, vector<8x32xf32>
      tpu.vector_store %arg16[%c0_43, %c0_44], %66 {strides = array<i32>} : memref<8x32xf32, #tpu.memory_space<vmem>>, vector<8x32xf32>,
    } else {
    }
    %c0 = arith.constant 0 : index
    %c0_1 = arith.constant 0 : index
    %c0_2 = arith.constant 0 : index
    %c0_3 = arith.constant 0 : index
    %3 = vector.load %arg2[%c0, %c0_1, %c0_2, %c0_3] : memref<8x1x3x256xbf16, #tpu.memory_space<vmem>>, vector<8x1x3x256xbf16>
    %4 = vector.shape_cast %3 : vector<8x1x3x256xbf16> to vector<8x3x256xbf16>
    %5 = arith.extf %4 : vector<8x3x256xbf16> to vector<8x3x256xf32>
    %cst = arith.constant dense<0.000000e+00> : vector<8x3xf32>
    %6 = vector.multi_reduction <add>, %5, %cst [2] : vector<8x3x256xf32> to vector<8x3xf32>
    %cst_4 = arith.constant 3.906250e-03 : f32
    %7 = vector.broadcast %cst_4 : f32 to vector<8x3xf32>
    %8 = arith.mulf %6, %7 : vector<8x3xf32>
    %9 = arith.truncf %8 : vector<8x3xf32> to vector<8x3xbf16>
    %c0_5 = arith.constant 0 : index
    %c0_6 = arith.constant 0 : index
    %10 = vector.load %arg5[%c0_5, %c0_6] : memref<3x1024xbf16, #tpu.memory_space<vmem>>, vector<3x1024xbf16>
    %cst_7 = arith.constant dense<0.000000e+00> : vector<8x1024xf32>
    %11 = tpu.matmul %9, %10, %cst_7 {dimension_numbers = #tpu.dot_dimension_numbers<[1], [0], [0], [1], [0, 0, 1, 1], [], []>} : vector<8x3xbf16>, vector<3x1024xbf16>, vector<8x1024xf32> -> vector<8x1024xf32>
    %c0_8 = arith.constant 0 : index
    %c0_9 = arith.constant 0 : index
    %12 = vector.load %arg6[%c0_8, %c0_9] : memref<1x1024xf32, #tpu.memory_space<vmem>>, vector<1x1024xf32>
    %13 = vector.broadcast %12 : vector<1x1024xf32> to vector<8x1024xf32>
    %14 = arith.addf %11, %13 : vector<8x1024xf32>
    %cst_10 = arith.constant 0.000000e+00 : f32
    %15 = vector.broadcast %cst_10 : f32 to vector<8x1024xf32>
    %16 = arith.maximumf %14, %15 : vector<8x1024xf32>
    %c0_11 = arith.constant 0 : index
    %c0_12 = arith.constant 0 : index
    %17 = vector.load %arg16[%c0_11, %c0_12] : memref<8x32xf32, #tpu.memory_space<vmem>>, vector<8x32xf32>
    %18 = arith.truncf %16 : vector<8x1024xf32> to vector<8x1024xbf16>
    %c0_13 = arith.constant 0 : index
    %c0_14 = arith.constant 0 : index
    %c0_15 = arith.constant 0 : index
    %19 = vector.load %arg9[%c0_13, %c0_14, %c0_15] : memref<1x1024x32xbf16, #tpu.memory_space<vmem>>, vector<1x1024x32xbf16>
    %20 = vector.shape_cast %19 : vector<1x1024x32xbf16> to vector<1024x32xbf16>
    %cst_16 = arith.constant dense<0.000000e+00> : vector<8x32xf32>
    %21 = tpu.matmul %18, %20, %cst_16 {dimension_numbers = #tpu.dot_dimension_numbers<[1], [0], [0], [1], [0, 0, 1, 1], [], []>} : vector<8x1024xbf16>, vector<1024x32xbf16>, vector<8x32xf32> -> vector<8x32xf32>
    %22 = arith.addf %17, %21 : vector<8x32xf32>
    %c0_17 = arith.constant 0 : index
    %c0_18 = arith.constant 0 : index
    %23 = vector.load %arg16[%c0_17, %c0_18] : memref<8x32xf32, #tpu.memory_space<vmem>>, vector<8x32xf32>
    tpu.vector_store %arg16[%c0_17, %c0_18], %22 {strides = array<i32>} : memref<8x32xf32, #tpu.memory_space<vmem>>, vector<8x32xf32>,
    %c0_19 = arith.constant 0 : index
    %c0_20 = arith.constant 0 : index
    %c0_21 = arith.constant 0 : index
    %24 = vector.load %arg3[%c0_19, %c0_20, %c0_21] : memref<1x8x3xf32, #tpu.memory_space<vmem>>, vector<1x8x3xf32>
    %25 = vector.shape_cast %24 : vector<1x8x3xf32> to vector<8x3xf32>
    %c0_22 = arith.constant 0 : index
    %c0_23 = arith.constant 0 : index
    %26 = vector.load %arg7[%c0_22, %c0_23] : memref<3x3xf32, #tpu.memory_space<vmem>>, vector<3x3xf32>
    %c0_24 = arith.constant 0 : index
    %c0_25 = arith.constant 0 : index
    %27 = vector.load %arg8[%c0_24, %c0_25] : memref<1x3xf32, #tpu.memory_space<vmem>>, vector<1x3xf32>
    %28 = vector.extract_strided_slice %25 {offsets = [0, 0], sizes = [8, 1], strides = [1, 1]} : vector<8x3xf32> to vector<8x1xf32>
    %29 = vector.extract_strided_slice %26 {offsets = [0, 0], sizes = [1, 3], strides = [1, 1]} : vector<3x3xf32> to vector<1x3xf32>
    %30 = vector.broadcast %28 : vector<8x1xf32> to vector<8x3xf32>
    %31 = vector.broadcast %29 : vector<1x3xf32> to vector<8x3xf32>
    %32 = arith.mulf %30, %31 : vector<8x3xf32>
    %33 = vector.broadcast %27 : vector<1x3xf32> to vector<8x3xf32>
    %34 = arith.addf %33, %32 : vector<8x3xf32>
    %35 = vector.extract_strided_slice %25 {offsets = [0, 1], sizes = [8, 1], strides = [1, 1]} : vector<8x3xf32> to vector<8x1xf32>
    %36 = vector.extract_strided_slice %26 {offsets = [1, 0], sizes = [1, 3], strides = [1, 1]} : vector<3x3xf32> to vector<1x3xf32>
    %37 = vector.broadcast %35 : vector<8x1xf32> to vector<8x3xf32>
    %38 = vector.broadcast %36 : vector<1x3xf32> to vector<8x3xf32>
    %39 = arith.mulf %37, %38 : vector<8x3xf32>
    %40 = arith.addf %34, %39 : vector<8x3xf32>
    %41 = vector.extract_strided_slice %25 {offsets = [0, 2], sizes = [8, 1], strides = [1, 1]} : vector<8x3xf32> to vector<8x1xf32>
    %42 = vector.extract_strided_slice %26 {offsets = [2, 0], sizes = [1, 3], strides = [1, 1]} : vector<3x3xf32> to vector<1x3xf32>
    %43 = vector.broadcast %41 : vector<8x1xf32> to vector<8x3xf32>
    %44 = vector.broadcast %42 : vector<1x3xf32> to vector<8x3xf32>
    %45 = arith.mulf %43, %44 : vector<8x3xf32>
    %46 = arith.addf %40, %45 : vector<8x3xf32>
    %47 = tpu.iota {dimensions = array<i32: 1>} : vector<8x3xi32>
    %c0_i32_26 = arith.constant 0 : i32
    %48 = vector.broadcast %c0_i32_26 : i32 to vector<8x3xi32>
    %49 = arith.cmpi eq, %47, %48 : vector<8x3xi32>
    %50 = math.sin %46 : vector<8x3xf32>
    %51 = arith.select %49, %46, %50 : vector<8x3xi1>, vector<8x3xf32>
    %c0_27 = arith.constant 0 : index
    %c0_28 = arith.constant 0 : index
    %52 = vector.load %arg16[%c0_27, %c0_28] : memref<8x32xf32, #tpu.memory_space<vmem>>, vector<8x32xf32>
    %c0_29 = arith.constant 0 : index
    %c0_30 = arith.constant 0 : index
    %c0_31 = arith.constant 0 : index
    %53 = vector.load %arg10[%c0_29, %c0_30, %c0_31] : memref<1x3x32xf32, #tpu.memory_space<vmem>>, vector<1x3x32xf32>
    %54 = vector.shape_cast %53 : vector<1x3x32xf32> to vector<3x32xf32>
    %cst_32 = arith.constant dense<0.000000e+00> : vector<8x32xf32>
    %55 = tpu.matmul %51, %54, %cst_32 {dimension_numbers = #tpu.dot_dimension_numbers<[1], [0], [0], [1], [0, 0, 1, 1], [], []>} : vector<8x3xf32>, vector<3x32xf32>, vector<8x32xf32> -> vector<8x32xf32>
    %56 = arith.addf %52, %55 : vector<8x32xf32>
    %c0_33 = arith.constant 0 : index
    %c0_34 = arith.constant 0 : index
    %57 = vector.load %arg16[%c0_33, %c0_34] : memref<8x32xf32, #tpu.memory_space<vmem>>, vector<8x32xf32>
    tpu.vector_store %arg16[%c0_33, %c0_34], %56 {strides = array<i32>} : memref<8x32xf32, #tpu.memory_space<vmem>>, vector<8x32xf32>,
    %c2_i32 = arith.constant 2 : i32
    %58 = arith.cmpi eq, %arg1, %c2_i32 : i32
    %59 = arith.extui %58 : i1 to i32
    %c0_i32_35 = arith.constant 0 : i32
    %60 = arith.cmpi ne, %59, %c0_i32_35 : i32
    scf.if %60 {
      %c0_36 = arith.constant 0 : index
      %c0_37 = arith.constant 0 : index
      %61 = vector.load %arg16[%c0_36, %c0_37] : memref<8x32xf32, #tpu.memory_space<vmem>>, vector<8x32xf32>
      %cst_38 = arith.constant 0.000000e+00 : f32
      %62 = vector.broadcast %cst_38 : f32 to vector<8x32xf32>
      %63 = arith.maximumf %61, %62 : vector<8x32xf32>
      %c0_39 = arith.constant 0 : index
      %c0_40 = arith.constant 0 : index
      %64 = vector.load %arg13[%c0_39, %c0_40] : memref<32x4xf32, #tpu.memory_space<vmem>>, vector<32x4xf32>
      %cst_41 = arith.constant dense<0.000000e+00> : vector<8x4xf32>
      %65 = tpu.matmul %63, %64, %cst_41 {dimension_numbers = #tpu.dot_dimension_numbers<[1], [0], [0], [1], [0, 0, 1, 1], [], []>} : vector<8x32xf32>, vector<32x4xf32>, vector<8x4xf32> -> vector<8x4xf32>
      %c0_42 = arith.constant 0 : index
      %c0_43 = arith.constant 0 : index
      %66 = vector.load %arg14[%c0_42, %c0_43] : memref<1x4xf32, #tpu.memory_space<vmem>>, vector<1x4xf32>
      %67 = vector.broadcast %66 : vector<1x4xf32> to vector<8x4xf32>
      %68 = arith.addf %65, %67 : vector<8x4xf32>
      %c0_44 = arith.constant 0 : index
      %c0_45 = arith.constant 0 : index
      %69 = vector.load %arg15[%c0_44, %c0_45] : memref<8x4xf32, #tpu.memory_space<vmem>>, vector<8x4xf32>
      tpu.vector_store %arg15[%c0_44, %c0_45], %68 {strides = array<i32>} : memref<8x4xf32, #tpu.memory_space<vmem>>, vector<8x4xf32>,
    } else {
    }
    return
  }
  func.func @transform_0(%arg0: i32, %arg1: i32) -> (i32, i32, i32, i32) {
    %c0_i32 = arith.constant 0 : i32
    %c0_i32_0 = arith.constant 0 : i32
    %c0_i32_1 = arith.constant 0 : i32
    return %arg0, %arg1, %c0_i32, %c0_i32_0 : i32, i32, i32, i32
  }
  func.func @transform_1(%arg0: i32, %arg1: i32) -> (i32, i32, i32) {
    %c0_i32 = arith.constant 0 : i32
    %c0_i32_0 = arith.constant 0 : i32
    return %arg1, %arg0, %c0_i32 : i32, i32, i32
  }
  func.func @transform_2(%arg0: i32, %arg1: i32) -> (i32, i32) {
    %c0_i32 = arith.constant 0 : i32
    %c0_i32_0 = arith.constant 0 : i32
    return %arg0, %c0_i32 : i32, i32
  }
  func.func @transform_3(%arg0: i32, %arg1: i32) -> (i32, i32) {
    %c0_i32 = arith.constant 0 : i32
    %c0_i32_0 = arith.constant 0 : i32
    %c0_i32_1 = arith.constant 0 : i32
    return %c0_i32, %c0_i32_0 : i32, i32
  }
  func.func @transform_4(%arg0: i32, %arg1: i32) -> (i32, i32) {
    %c0_i32 = arith.constant 0 : i32
    %c0_i32_0 = arith.constant 0 : i32
    %c0_i32_1 = arith.constant 0 : i32
    return %c0_i32, %c0_i32_0 : i32, i32
  }
  func.func @transform_5(%arg0: i32, %arg1: i32) -> (i32, i32) {
    %c0_i32 = arith.constant 0 : i32
    %c0_i32_0 = arith.constant 0 : i32
    %c0_i32_1 = arith.constant 0 : i32
    return %c0_i32, %c0_i32_0 : i32, i32
  }
  func.func @transform_6(%arg0: i32, %arg1: i32) -> (i32, i32) {
    %c0_i32 = arith.constant 0 : i32
    %c0_i32_0 = arith.constant 0 : i32
    %c0_i32_1 = arith.constant 0 : i32
    return %c0_i32, %c0_i32_0 : i32, i32
  }
  func.func @transform_7(%arg0: i32, %arg1: i32) -> (i32, i32, i32) {
    %c0_i32 = arith.constant 0 : i32
    %c0_i32_0 = arith.constant 0 : i32
    %c0_i32_1 = arith.constant 0 : i32
    return %arg1, %c0_i32, %c0_i32_0 : i32, i32, i32
  }
  func.func @transform_8(%arg0: i32, %arg1: i32) -> (i32, i32, i32) {
    %c0_i32 = arith.constant 0 : i32
    %c0_i32_0 = arith.constant 0 : i32
    %c0_i32_1 = arith.constant 0 : i32
    return %arg1, %c0_i32, %c0_i32_0 : i32, i32, i32
  }
  func.func @transform_9(%arg0: i32, %arg1: i32) -> (i32, i32) {
    %c0_i32 = arith.constant 0 : i32
    %c0_i32_0 = arith.constant 0 : i32
    %c0_i32_1 = arith.constant 0 : i32
    return %c0_i32, %c0_i32_0 : i32, i32
  }
  func.func @transform_10(%arg0: i32, %arg1: i32) -> (i32, i32) {
    %c0_i32 = arith.constant 0 : i32
    %c0_i32_0 = arith.constant 0 : i32
    %c0_i32_1 = arith.constant 0 : i32
    return %c0_i32, %c0_i32_0 : i32, i32
  }
  func.func @transform_11(%arg0: i32, %arg1: i32) -> (i32, i32) {
    %c0_i32 = arith.constant 0 : i32
    %c0_i32_0 = arith.constant 0 : i32
    %c0_i32_1 = arith.constant 0 : i32
    return %c0_i32, %c0_i32_0 : i32, i32
  }
  func.func @transform_12(%arg0: i32, %arg1: i32) -> (i32, i32) {
    %c0_i32 = arith.constant 0 : i32
    %c0_i32_0 = arith.constant 0 : i32
    %c0_i32_1 = arith.constant 0 : i32
    return %c0_i32, %c0_i32_0 : i32, i32
  }
  func.func @transform_13(%arg0: i32, %arg1: i32) -> (i32, i32) {
    %c0_i32 = arith.constant 0 : i32
    %c0_i32_0 = arith.constant 0 : i32
    return %arg0, %c0_i32 : i32, i32
  }
}

</mosaic_0001>

<bundles_post_ra>
// kernel: resnet_forward.1
= control target key start
LH: loop header
LB: loop body
LE: loop exit
PB: predicated region body
PF: predicated region fallthrough
CT: control target
= control target key end

     0   :  { %s3120_s0 = inlined_call_operand.vmem [shape: bf16[8,3,3,256], index: 0, kind: input, shape index: {}]   ;;  %s3121_s1 = inlined_call_operand.vmem [shape: f32[3,8,3], index: 1, kind: input, shape index: {}]   ;;  %s3122_s2 = inlined_call_operand.vmem [shape: f32[8,3], index: 2, kind: input, shape index: {}]   ;;  %s3123_s3 = inlined_call_operand.vmem [shape: bf16[3,1024], index: 3, kind: input, shape index: {}]   ;;  %s3124_s4 = inlined_call_operand.vmem [shape: f32[1,1024], index: 4, kind: input, shape index: {}]   ;;  %s3125_s5 = inlined_call_operand.vmem [shape: f32[3,3], index: 5, kind: input, shape index: {}]   ;;  %s3126_s6 = inlined_call_operand.vmem [shape: f32[1,3], index: 6, kind: input, shape index: {}]   ;;  %s3127_s7 = inlined_call_operand.vmem [shape: bf16[3,1024,32], index: 7, kind: input, shape index: {}]   ;;  %s3128_s8 = inlined_call_operand.vmem [shape: f32[3,3,32], index: 8, kind: input, shape index: {}]   ;;  %s3129_s9 = inlined_call_operand.vmem [shape: f32[3,32], index: 9, kind: input, shape index: {}]   ;;  %s3130_s10 = inlined_call_operand.vmem [shape: f32[1,32], index: 10, kind: input, shape index: {}]   ;;  %s3131_s11 = inlined_call_operand.vmem [shape: f32[32,4], index: 11, kind: input, shape index: {}]   ;;  %s3132_s12 = inlined_call_operand.vmem [shape: f32[1,4], index: 12, kind: input, shape index: {}]   ;;  %s3133_s13 = inlined_call_operand.vmem [shape: f32[8,4], index: 13, kind: output, shape index: {}]  }
   0x1   :  { %3138 = sst [smem:[#allocation9_spill]] %s3120_s0 }
   0x2   :  { %s2781_s25 = smov 0   ;;  %s2783_s26 = smov 0  }
   0x3   :  { %s2785_s27 = smov 0   ;;  %s2787_s28 = smov 0  }
   0x4   :  { %s2789_s29 = smov 0  }
   0x5 LB: > { %3139 = sst [smem:[#allocation4_spill]] %s2679_s26  ;;  %s32_s30 = sadd.s32 1, %s2687_s28  ;;  %s2691_s29 = sphi %s2789_s29, %s23_s29   ;;  %s2687_s28 = sphi %s2787_s28, %s3151_s28   ;;  %s2683_s27 = sphi %s2785_s27, %s3150_s27   ;;  %s2679_s26 = sphi %s2783_s26, %s3149_s26   ;;  %s2675_s25 = sphi %s2781_s25, %s3148_s25  }
   0x6   : > { %3140 = sst [smem:[#allocation5_spill]] %s2687_s28  ;;  %p33_p0 = scmp.ge.s32.totalorder %s32_s30, 3 }
   0x7   : > { %3141 = sst [smem:[#allocation6_spill]] %s2691_s29  ;;  %p51_p1 = scmp.ne.s32.totalorder %s2679_s26, %s2675_s25 }
   0x8   : > { %p52_p2 = scmp.eq.s32.totalorder %s2691_s29, 0  ;;  %s3153_s30 = smov (%p33_p0, %s32_s30), 0 }
   0x9   : > { %3142 = sst [smem:[#allocation7_spill]] %s3153_s30  ;;  %s40_s14 = ssub.s32 %s2687_s28, %s3153_s30 }
   0xa   : > { %p53_p3 = por %p52_p2, %p51_p1  ;;  %s44_s15 = sadd.s32 1, %s2679_s26 }
   0xb   : > { %p42_p4 = scmp.eq.s32.totalorder %s40_s14, 0  ;;  %p2277_p5 = scmp.ge.s32.totalorder %s2691_s29, 3 }
   0xd   : > { %s2816_s16 = scalar_select %p42_p4, %s2679_s26, %s44_s15  }
   0xe   : > { %408 = sbr.rel (%p2277_p5) target bundleno = 36 (0x24), region = 52 }
   0xf   : > { %3143 = sst [smem:[#allocation8_spill]] %s2816_s16 }
  0x15   : > { %411 = sbr.rel (!%p53_p3) target bundleno = 36 (0x24), region = 56  ;;  %s413_s17 = sand.u32 (%p53_p3), 1, %s2679_s26  }
  0x16   : > { %s2372_s18 = sshll.u32 (%p53_p3), %s2687_s28, 2  ;;  %s2278_s19 = sshll.u32 (%p53_p3), %s413_s17, 5 }
  0x17   : > { %s3144_s0 = sld [smem:[#allocation9_spill]] (%p53_p3)  ;;  %s415_s23 = scalar_lea.vmem (%p53_p3), [#allocation3], %s2278_s19 }
  0x1d   : > { %s421_s22 = scalar_lea.vmem %s3144_s0, %s2372_s18 }
  0x1e   : > { %v437_v0 = vld [vmem:[%s421_s22] sm:$0xf]  ;;  %v439_v1 = vld [vmem:[%s421_s22 + $0xc] sm:$0xf]  ;;  %v441_v2 = vld [vmem:[%s421_s22 + $0x18] sm:$0xf] }
  0x1f   : > { %438 = vst [vmem:[%s415_s23] sm:$0xf] %v437_v0  ;;  %440 = vst [vmem:[%s415_s23 + $0x4] sm:$0xf] %v439_v1  ;;  %v443_v3 = vld [vmem:[%s421_s22 + $0x24] sm:$0xf] }
  0x20   : > { %v445_v4 = vld [vmem:[%s421_s22 + $0x30] sm:$0xf]  ;;  %442 = vst [vmem:[%s415_s23 + $0x8] sm:$0xf] %v441_v2  ;;  %444 = vst [vmem:[%s415_s23 + $0xc] sm:$0xf] %v443_v3 }
  0x21   : > { %446 = vst [vmem:[%s415_s23 + $0x10] sm:$0xf] %v445_v4  ;;  %v447_v5 = vld [vmem:[%s421_s22 + $0x3c] sm:$0xf]  ;;  %v449_v6 = vld [vmem:[%s421_s22 + $0x48] sm:$0xf] }
  0x22   : > { %v451_v7 = vld [vmem:[%s421_s22 + $0x54] sm:$0xf]  ;;  %448 = vst [vmem:[%s415_s23 + $0x14] sm:$0xf] %v447_v5  ;;  %450 = vst [vmem:[%s415_s23 + $0x18] sm:$0xf] %v449_v6 }
  0x23   : > { %452 = vst [vmem:[%s415_s23 + $0x1c] sm:$0xf] %v451_v7 }
  0x24 PF: > { %p2281_p6 = scmp.ge.s32.totalorder %s2691_s29, 1  ;;  %p515_p7 = scmp.lt.s32.totalorder %s2691_s29, 4 }
  0x26   : > { %p516_p8 = pnand %p2281_p6, %p515_p7 }
  0x27   : > { %s522_s24 = sand.u32 (!%p516_p8), 1, %s2675_s25   ;;  %p585_p9 = scmp.lt.s32.totalorder (!%p516_p8), %s2683_s27, 2 }
  0x28   : > { %519 = sbr.rel (%p516_p8) target bundleno = 1148 (0x47c), region = 109  ;;  %s2282_s14 = sshll.u32 (!%p516_p8), %s522_s24, 5 }
  0x29   : > { %s524_s24 = scalar_lea.vmem (!%p516_p8), [#allocation3], %s2282_s14  ;;  %p2287_p10 = scmp.ne.s32.totalorder (!%p516_p8), %s2683_s27, 0 }
  0x2f   : > { %s586_s15 = scalar_select %p585_p9, %s2683_s27, 2 }
  0x30   : > { %613 = sbr.rel (%p2287_p10) target bundleno = 266 (0x10a), region = 117  ;;  %v616_v8 = vld [vmem:[%s3129_s9] sm:$0x7] (!%p2287_p10)  ;;  %vm621_vm0 = vcmask (!%p2287_p10), 1042432   ;;  %v2693_v10 = vmov (!%p2287_p10), 0.0   ;;  %vm2694_vm1 = vmmov (!%p2287_p10), 0  }
  0x31   : > { %s2283_s17 = sshll.u32 %s586_s15, 3  ;;  %s2373_s18 = sshll.u32 %s586_s15, 9  ;;  %v615_v9 = vld [vmem:[%s3122_s2] sm:$0xff] (!%p2287_p10)  ;;  %2490 = vmatprep.subr.mxu0 (!%p2287_p10), %v2693_v10  ;;  %2492 = vmatprep.mubr.msk.f32.mxu0 (!%p2287_p10), %vm2694_vm1, %v2693_v10  ;;  %vm617_vm2 = vcmask (!%p2287_p10), 23552   ;;  %vm702_vm3 = vcmask (!%p2287_p10), 261120  }
  0x32   : > { %s2832_s21 = scalar_lea.vmem %s3121_s1, %s2283_s17  ;;  %s2837_s0 = scalar_lea.vmem %s3127_s7, %s2373_s18  ;;  %2491 = vmatpush3.msk.msra.mxu0 (!%p2287_p10), %vm621_vm0, %v616_v8  ;;  %v2290_v11 = vld [vmem:[%s3130_s10] ss:$0 sm:$0xff] (!%p2287_p10) }
  0x33   : > { %s2286_s30 = sshll.u32 %s586_s15, 2  ;;  %2493 = vmatmul.mubr.msk.f32.vlgmr.msra.gmra.mrb[0].mxu0 (!%p2287_p10), %vm617_vm2, %v615_v9 }
  0x34   : > { %s2842_s25 = scalar_lea.vmem %s3128_s8, %s2286_s30 }
 0x106   : > { %v691_v12 = vpop.f32.mrb[0].mxu0 }
 0x107   : > { %v701_v13 = vadd.f32 %v2290_v11, %v691_v12  ;;  %v2494_v14 = vpop.f32.mrb[1].mxu0 }
 0x109   : > { %703 = vst.msk [vmem:[#allocation2] sm:$0xff] %vm702_vm3, %v701_v13 }
 0x10a PF: > { %v2375_v15 = vld [vmem:[%s524_s24] sm:$0xff]   ;;  %vm744_vm4 = vcmask 1042432   ;;  %v2390_v16 = vld [vmem:[%s524_s24 + $0x8] sm:$0xff]   ;;  %v2391_v17 = vld [vmem:[%s524_s24 + $0x10] sm:$0xff]   ;;  %v2695_v23 = vmov 1   ;;  %v2696_v24 = vmov 0   ;;  %v805_v61 = vlaneseq }
 0x10b   : > { %v2376_v18 = vunpack.c.l.bf16 %v2375_v15  ;;  %v2380_v19 = vunpack.c.l.bf16 %v2390_v16  ;;  %v2377_v20 = vunpack.c.h.bf16 %v2375_v15  ;;  %v2381_v21 = vunpack.c.h.bf16 %v2390_v16  ;;  %v2392_v22 = vld [vmem:[%s524_s24 + $0x18] sm:$0xff]   ;;  %2580 = vset.pattern.permute.xlu1 %v2695_v23  ;;  %2579 = vset.pattern.permute.xlu0 %v2696_v24  ;;  %p2366_p11 = scmp.ne.s32.totalorder %s2683_s27, 2 }
 0x10c   : > { %v2384_v25 = vunpack.c.l.bf16 %v2391_v17  ;;  %v2385_v26 = vunpack.c.h.bf16 %v2391_v17  ;;  %v2388_v27 = vunpack.c.l.bf16 %v2392_v22  ;;  %1010 = vmatprep.mubr.bf16.mxu0 %v2696_v24  ;;  %1051 = vmatprep.mubr.bf16.mxu1 %v2696_v24  ;;  %v2389_v35 = vunpack.c.h.bf16 %v2392_v22  ;;  %v801_v2 = vld [vmem:[%s3123_s3] sm:$0xff] }
 0x10d   : > { %v728_v28 = vcombine.high %v2376_v18, %v2376_v18  ;;  %v745_v29 = vsel %vm744_vm4, %v2376_v18, 0.0  ;;  %v730_v30 = vcombine.high %v2380_v19, %v2380_v19  ;;  %v755_v31 = vsel %vm744_vm4, %v2380_v19, 0.0  ;;  %v1834_v3 = vld [vmem:[%s2832_s21] sm:$0xff]  ;;  %v802_v18 = vld [vmem:[%s3123_s3 + $0x8] sm:$0xff] }
 0x10e   : > { %v729_v32 = vcombine.high %v2377_v20, %v2377_v20  ;;  %v750_v33 = vsel %vm744_vm4, %v2377_v20, 0.0  ;;  %v731_v34 = vcombine.high %v2381_v21, %v2381_v21  ;;  %v760_v38 = vsel %vm744_vm4, %v2381_v21, 0.0 }
 0x10f   : > { %v746_v36 = vsel %vm744_vm4, %v728_v28, 0.0  ;;  %v756_v37 = vsel %vm744_vm4, %v730_v30, 0.0  ;;  %v732_v39 = vcombine.high %v2384_v25, %v2384_v25  ;;  %v733_v44 = vcombine.high %v2385_v26, %v2385_v26 }
 0x110   : > { %v747_v40 = vadd.f32 %v746_v36, %v745_v29  ;;  %v757_v41 = vadd.f32 %v756_v37, %v755_v31  ;;  %v751_v42 = vsel %vm744_vm4, %v729_v32, 0.0  ;;  %v761_v43 = vsel %vm744_vm4, %v731_v34, 0.0 }
 0x111   : > { %v752_v45 = vadd.f32 %v751_v42, %v750_v33  ;;  %v762_v46 = vadd.f32 %v761_v43, %v760_v38  ;;  %v765_v47 = vsel %vm744_vm4, %v2384_v25, 0.0  ;;  %v734_v48 = vcombine.high %v2388_v27, %v2388_v27 }
 0x112   : > { %748 = vadd.xlane.f32.xlu0 %v747_v40  ;;  %758 = vadd.xlane.f32.xlu1 %v757_v41  ;;  %v766_v49 = vsel %vm744_vm4, %v732_v39, 0.0  ;;  %v770_v50 = vsel %vm744_vm4, %v2385_v26, 0.0  ;;  %v771_v51 = vsel %vm744_vm4, %v733_v44, 0.0  ;;  %v735_v52 = vcombine.high %v2389_v35, %v2389_v35 }
 0x113   : > { %v775_v53 = vsel %vm744_vm4, %v2388_v27, 0.0  ;;  %v780_v54 = vsel %vm744_vm4, %v2389_v35, 0.0  ;;  %v776_v55 = vsel %vm744_vm4, %v734_v48, 0.0  ;;  %v767_v57 = vadd.f32 %v766_v49, %v765_v47 }
 0x114   : > { %v781_v56 = vsel %vm744_vm4, %v735_v52, 0.0  ;;  %v772_v58 = vadd.f32 %v771_v51, %v770_v50  ;;  %v777_v59 = vadd.f32 %v776_v55, %v775_v53  ;;  %v2873_v62 = vshrl.u32 %v805_v61, 7 }
 0x115   : > { %v782_v60 = vadd.f32 %v781_v56, %v780_v54  ;;  %v2697_v63 = vmov 1983009808   ;;  %v912_v5 = vcombine.high %v801_v2, %v801_v2  ;;  %vm950_vm5 = vcmask 1040384  }
 0x116   : > { %753 = vadd.xlane.f32.xlu0 %v752_v45  ;;  %763 = vadd.xlane.f32.xlu1 %v762_v46  ;;  %v914_v0 = vunpack.c.l.s4 %v2697_v63  ;;  %vm951_vm6 = vcmask 1041408   ;;  %v2698_v9 = vmov 65535   ;;  %v2699_v14 = vmov 2  }
 0x117   : > { %v952_v10 = vsel %vm950_vm5, 4294967295, %v2698_v9  ;;  %v929_v19 = vcombine.high %v802_v18, %v802_v18  ;;  %v2903_v33 = vand.u32 127, %v805_v61  ;;  %vm895_vm7 = vcmask 1041409  }
 0x118   : > { %v915_v1 = vunpack.c.0.s8 %v914_v0  ;;  %v2880_v11 = vsel %vm951_vm6, %v952_v10, 0  ;;  %vm897_vm8 = vcmask 1042434   ;;  %vm899_vm9 = vcmask 1043459  }
 0x119   : > { %v865_v40 = vsub.s32 %v2903_v33, %v2873_v62  ;;  %vm901_vm10 = vcmask 1044484   ;;  %vm903_vm11 = vcmask 1045509   ;;  %vm905_vm12 = vcmask 1046534  }
 0x11a   : > { %768 = vadd.xlane.f32.xlu0 %v767_v57  ;;  %773 = vadd.xlane.f32.xlu1 %v772_v58  ;;  %v918_v4 = vsub.s32 %v915_v1, %v2873_v62  ;;  %vm907_vm13 = vcmask 1047559   ;;  %vm946_vm14 = vcmask 23552  }
 0x11c   : > { %v919_v6 = vrot.slane %v801_v2, %v918_v4  ;;  %v926_v7 = vrot.slane %v912_v5, %v918_v4  ;;  %v2889_v20 = vrot.slane %v802_v18, %v918_v4  ;;  %v2891_v21 = vrot.slane %v929_v19, %v918_v4  ;;  %v2586_v18 = vld [vmem:[%s2837_s0 + $0xc0] sm:$0xff]  }
 0x11d   : > { %v2587_v19 = vld [vmem:[%s2837_s0] sm:$0xff]  }
 0x11e   : > { %778 = vadd.xlane.f32.xlu0 %v777_v59  ;;  %783 = vadd.xlane.f32.xlu1 %v782_v60  ;;  %v927_v8 = vcombine.high %v919_v6, %v919_v6  ;;  %v928_v12 = vcombine.high %v926_v7, %v926_v7  ;;  %v955_v16 = vand.u32 %v2880_v11, %v919_v6 }
 0x11f   : > { %v961_v17 = vand.u32 %v2880_v11, %v926_v7  ;;  %v944_v22 = vcombine.high %v2889_v20, %v2889_v20  ;;  %v945_v23 = vcombine.high %v2891_v21, %v2891_v21  ;;  %v967_v25 = vand.u32 %v2880_v11, %v2889_v20  ;;  %v2590_v20 = vld [vmem:[%s2837_s0 + $0xc8] sm:$0xff]  }
 0x120   : > { %v958_v13 = vand.u32 %v2880_v11, %v927_v8  ;;  %v964_v15 = vand.u32 %v2880_v11, %v928_v12  ;;  %v973_v26 = vand.u32 %v2880_v11, %v2891_v21  ;;  %v2593_v21 = vld [vmem:[%s2837_s0 + $0x50] sm:$0xff]  }
 0x121   : > { %v970_v27 = vand.u32 %v2880_v11, %v944_v22  ;;  %v976_v28 = vand.u32 %v2880_v11, %v945_v23  ;;  %v2588_v22 = vld [vmem:[%s2837_s0 + $0x80] sm:$0xff]   ;;  %v2589_v23 = vld [vmem:[%s2837_s0 + $0x48] sm:$0xff]  }
 0x122   : > { %978 = vmatprep.subr.bf16.mxu0 %v958_v13  ;;  %1019 = vmatprep.subr.bf16.mxu1 %v964_v15  ;;  %v2591_v11 = vld [vmem:[%s2837_s0 + $0x8] sm:$0xff]  }
 0x123   : > { %979 = vmatpush1.bf16.msra.mxu0 %v955_v16  ;;  %1020 = vmatpush1.bf16.msra.mxu1 %v961_v17  ;;  %v2585_v17 = vld [vmem:[%s2837_s0 + $0x40] sm:$0xff]  }
 0x124   : > { %1060 = vmatprep.subr.bf16.mxu0 %v970_v27  ;;  %1101 = vmatprep.subr.bf16.mxu1 %v976_v28  ;;  %v2596_v27 = vld [vmem:[%s2837_s0 + $0x90] sm:$0xff]   ;;  %v2597_v28 = vld [vmem:[%s2837_s0 + $0x58] sm:$0xff]  }
 0x12f   : > { %1855 = vperm.xlu1 %2580, %v1834_v3  }
 0x133   : > { %2581 = vset.pattern.permute.xlu1 %v2699_v14 }
 0x134   : > { %1839 = vperm.xlu0 %2579, %v1834_v3   ;;  %1865 = vperm.xlu1 %2581, %v1834_v3  }
 0x138   : > { %2582 = vset.pattern.permute.xlu0 %v2699_v14 }
 0x19f   : > { %v749_v29 = vpop.xlane.xlu0 %748  ;;  %v759_v30 = vpop.xlane.xlu1 %758 }
 0x1a0   : > { %v785_v31 = vmul.f32 0.00390625, %v749_v29  ;;  %v787_v32 = vmul.f32 0.00390625, %v759_v30  ;;  %v2598_v29 = vld [vmem:[%s2837_s0 + $0xd8] sm:$0xff]  }
 0x1a1   : > { %v2599_v30 = vld [vmem:[%s2837_s0 + $0x18] sm:$0xff]  }
 0x1a2   : > { %v793_v34 = vpack.c.bf16 %v785_v31, %v785_v31  ;;  %v795_v35 = vpack.c.bf16 %v787_v32, %v787_v32  ;;  %v2600_v31 = vld [vmem:[%s2837_s0 + $0x98] sm:$0xff]   ;;  %v2601_v32 = vld [vmem:[%s2837_s0 + $0x60] sm:$0xff]  }
 0x1a3   : > { %v754_v36 = vpop.xlane.xlu0 %753  ;;  %v764_v37 = vpop.xlane.xlu1 %763 }
 0x1a4   : > { %v786_v38 = vmul.f32 0.00390625, %v754_v36  ;;  %v788_v39 = vmul.f32 0.00390625, %v764_v37  ;;  %v853_v41 = vunpack.c.l.b16 %v793_v34  ;;  %v855_v44 = vunpack.c.l.b16 %v795_v35  ;;  %v2602_v34 = vld [vmem:[%s2837_s0 + $0xe0] sm:$0xff]   ;;  %v2605_v37 = vld [vmem:[%s2837_s0 + $0x68] sm:$0xff]  }
 0x1a5   : > { %v2603_v35 = vld [vmem:[%s2837_s0 + $0x20] sm:$0xff]  }
 0x1a6   : > { %v794_v42 = vpack.c.bf16 %v786_v38, %v786_v38  ;;  %v796_v43 = vpack.c.bf16 %v788_v39, %v788_v39  ;;  %v866_v51 = vrot.slane %v853_v41, %v865_v40  ;;  %v874_v56 = vrot.slane %v855_v44, %v865_v40  ;;  %v2604_v36 = vld [vmem:[%s2837_s0 + $0xa0] sm:$0xff]   ;;  %v2606_v38 = vld [vmem:[%s2837_s0 + $0xe8] sm:$0xff]  }
 0x1a7   : > { %v769_v45 = vpop.xlane.xlu0 %768  ;;  %v774_v46 = vpop.xlane.xlu1 %773  ;;  %v2607_v39 = vld [vmem:[%s2837_s0 + $0x28] sm:$0xff]   ;;  %v807_v41 = vsub.s32 0, %v2873_v62 }
 0x1a8   : > { %v854_v47 = vunpack.c.l.b16 %v794_v42  ;;  %v856_v48 = vunpack.c.l.b16 %v796_v43  ;;  %v789_v49 = vmul.f32 0.00390625, %v769_v45  ;;  %v790_v50 = vmul.f32 0.00390625, %v774_v46  ;;  %v1835_v42 = vld [vmem:[%s3125_s5] sm:$0x7] }
 0x1a9   : > { %v811_v43 = vsub.s32 1, %v2873_v62  ;;  %v1845_v44 = vrot.slane %v1835_v42, %v807_v41 }
 0x1aa   : > { %v870_v52 = vrot.slane %v854_v47, %v865_v40  ;;  %v878_v53 = vrot.slane %v856_v48, %v865_v40  ;;  %v797_v54 = vpack.c.bf16 %v789_v49, %v789_v49  ;;  %v798_v55 = vpack.c.bf16 %v790_v50, %v790_v50  ;;  %v2359_v50 = vld [vmem:[%s3126_s6] ss:$0 sm:$0xff] }
 0x1ab   : > { %v779_v57 = vpop.xlane.xlu0 %778  ;;  %v784_v58 = vpop.xlane.xlu1 %783  ;;  %v1861_v47 = vrot.slane %v1835_v42, %v811_v43  ;;  %v815_v49 = vsub.s32 2, %v2873_v62 }
 0x1ac   : > { %v896_v59 = vsel %vm895_vm7, %v870_v52, %v866_v51  ;;  %v857_v60 = vunpack.c.l.b16 %v797_v54  ;;  %v858_v61 = vunpack.c.l.b16 %v798_v55  ;;  %v791_v63 = vmul.f32 0.00390625, %v779_v57  ;;  %v2609_v51 = vld [vmem:[%s2837_s0 + $0x70] sm:$0xff]  }
 0x1ad   : > { %v898_v0 = vsel %vm897_vm8, %v874_v56, %v896_v59  ;;  %v792_v1 = vmul.f32 0.00390625, %v784_v58  ;;  %v2610_v52 = vld [vmem:[%s2837_s0 + $0xf0] sm:$0xff]   ;;  %v1871_v55 = vrot.slane %v1835_v42, %v815_v49  ;;  %v2613_v59 = vld [vmem:[%s2837_s0 + $0x78] sm:$0xff]  }
 0x1ae   : > { %v900_v2 = vsel %vm899_vm9, %v878_v53, %v898_v0  ;;  %v882_v3 = vrot.slane %v857_v60, %v865_v40  ;;  %v799_v4 = vpack.c.bf16 %v791_v63, %v791_v63  ;;  %v886_v5 = vrot.slane %v858_v61, %v865_v40  ;;  %v2611_v56 = vld [vmem:[%s2837_s0 + $0x30] sm:$0xff]   ;;  %v2614_v60 = vld [vmem:[%s2837_s0 + $0xf8] sm:$0xff]  }
 0x1af   : > { %v800_v6 = vpack.c.bf16 %v792_v1, %v792_v1  ;;  %v1856_v46 = vpop.permute.xlu1 %1855  ;;  %v2612_v57 = vld [vmem:[%s2837_s0 + $0xb0] sm:$0xff]   ;;  %v2615_v0 = vld [vmem:[%s2837_s0 + $0x38] sm:$0xff]  }
 0x1b0   : > { %v902_v7 = vsel %vm901_vm10, %v882_v3, %v900_v2  ;;  %v859_v8 = vunpack.c.l.b16 %v799_v4  ;;  %v1862_v53 = vmul.f32 %v1861_v47, %v1856_v46  ;;  %v2616_v1 = vld [vmem:[%s2837_s0 + $0xb8] sm:$0xff]   ;;  %v2617_v2 = vld [vmem:[%s2837_s0 + $0x140] sm:$0xff]  }
 0x1b1   : > { %v860_v9 = vunpack.c.l.b16 %v800_v6  ;;  %v904_v12 = vsel %vm903_vm11, %v886_v5, %v902_v7  ;;  %v2618_v3 = vld [vmem:[%s2837_s0 + $0x1c0] sm:$0xff]  }
 0x1b2   : > { %v890_v10 = vrot.slane %v859_v8, %v865_v40 }
 0x1b3   : > { %v894_v13 = vrot.slane %v860_v9, %v865_v40  ;;  %v2608_v40 = vld [vmem:[%s2837_s0 + $0xa8] sm:$0xff]   ;;  %v1840_v45 = vpop.permute.xlu0 %1839  ;;  %v1866_v58 = vpop.permute.xlu1 %1865 }
 0x1b4   : > { %v906_v14 = vsel %vm905_vm12, %v890_v10, %v904_v12  ;;  %v1846_v48 = vmul.f32 %v1845_v44, %v1840_v45  ;;  %v1872_v63 = vmul.f32 %v1871_v55, %v1866_v58  ;;  %vm2707_vm12 = vmmov 0  }
 0x1b5   : > { %v908_v15 = vsel %vm907_vm13, %v894_v13, %v906_v14  ;;  %v2700_v13 = vmov 2102212464  }
 0x1b6   : > { %v909_v16 = vpack.c.b16 %v908_v15, %v908_v15  ;;  %v1853_v54 = vadd.f32 %v2359_v50, %v1846_v48  ;;  %v2701_v15 = vmov 920167782  }
 0x1b8   : > { %2291 = vmatmul.mubr.msk.bf16.vlgmr.msra.gmra.mrb[0].mxu0 %vm946_vm14, %v909_v16  ;;  %2292 = vmatmul.mubr.msk.bf16.vlgmr.msra.gmra.mrb[0].mxu1 %vm946_vm14, %v909_v16  ;;  %v1863_v61 = vadd.f32 %v1862_v53, %v1853_v54 }
 0x1b9   : > { %1061 = vmatpush1.bf16.msra.mxu0 %v967_v25  ;;  %1102 = vmatpush1.bf16.msra.mxu1 %v973_v26  ;;  %v2594_v25 = vld [vmem:[%s2837_s0 + $0xd0] sm:$0xff]  }
 0x1ba   : > { %1092 = vmatprep.mubr.bf16.mxu0 %v2696_v24  ;;  %1133 = vmatprep.mubr.bf16.mxu1 %v2696_v24  ;;  %v2592_v24 = vld [vmem:[%s2837_s0 + $0x88] sm:$0xff]   ;;  %v2595_v26 = vld [vmem:[%s2837_s0 + $0x10] sm:$0xff]   ;;  %v2968_v4 = vadd.f32 %v1872_v63, %v1863_v61 }
 0x1bb   : > { %2395 = vmatprep.subr.bf16.mxu0 %v2585_v17  ;;  %2417 = vmatprep.subr.bf16.mxu1 %v2586_v18 }
 0x1bc   : > { %v1878_v5 = vand.u32 2139095040, %v2968_v4  ;;  %vm1877_vm7 = vcmp.lt.s32.totalorder %v2968_v4, 0  ;;  %vm1967_vm13 = vweird.f32 %v2968_v4 }
 0x1be   : > { %v1879_v6 = vshrl.u32 %v1878_v5, 23 }
 0x1c0   : > { %2293 = vmatmul.mubr.msk.bf16.vlgmr.msra.gmra.mrb[4].mxu0 %vm946_vm14, %v909_v16  ;;  %2294 = vmatmul.mubr.msk.bf16.vlgmr.msra.gmra.mrb[4].mxu1 %vm946_vm14, %v909_v16  ;;  %v2360_v7 = vadd.s32 4294967169, %v1879_v6 }
 0x1c1   : > { %2396 = vmatpush3.bf16.msra.mxu0 %v2587_v19  ;;  %2418 = vmatpush3.bf16.msra.mxu1 %v2588_v22  ;;  %v2702_v19 = vmov 1326507024  }
 0x1c2   : > { %2397 = vmatprep.subr.bf16.mxu0 %v2589_v23  ;;  %2419 = vmatprep.subr.bf16.mxu1 %v2590_v20  ;;  %v1885_v8 = vadd.s32 1, %v2360_v7  ;;  %v1875_v23 = vand.u32 2147483647, %v2968_v4  ;;  %v2703_v20 = vmov 683565275  }
 0x1c4   : > { %vm1886_vm15 = vcmp.gt.s32.totalorder %v1885_v8, 0  ;;  %vm3038_vm8 = vcmp.le.f32.partialorder %v1875_v23, 0.7853982 }
 0x1c5   : > { %2398 = vmatpush3.bf16.msra.mxu0 %v2591_v11  ;;  %2420 = vmatpush3.bf16.msra.mxu1 %v2592_v24  ;;  %v1887_v9 = vsel %vm1886_vm15, %v1885_v8, 0  ;;  %v2704_v24 = vmov 2475754826   ;;  %vm1874_vm15 = vcmp.eq.s32.totalorder %v2903_v33, 0 }
 0x1c6   : > { %2399 = vmatprep.subr.bf16.mxu0 %v2593_v21  ;;  %2421 = vmatprep.subr.bf16.mxu1 %v2594_v25  ;;  %v1889_v10 = vand.u32 31, %v1887_v9  ;;  %v1888_v17 = vshrl.u32 %v1887_v9, 5 }
 0x1c8   : > { %v1890_v12 = vsub.s32 32, %v1889_v10  ;;  %v1901_v14 = vshll.u32 %v2700_v13, %v1889_v10  ;;  %v1904_v18 = vshll.u32 %v2701_v15, %v1889_v10  ;;  %v1892_v11 = vshll.u32 %v2703_v20, %v1889_v10 }
 0x1c9   : > { %2400 = vmatpush3.bf16.msra.mxu0 %v2595_v26  ;;  %2422 = vmatpush3.bf16.msra.mxu1 %v2596_v27  ;;  %v1895_v21 = vshll.u32 %v2704_v24, %v1889_v10  ;;  %v2705_v26 = vmov 2131351028   ;;  %vm1910_vm0 = vcmp.lt.s32.totalorder %v1888_v17, 4  ;;  %vm1907_vm1 = vcmp.lt.s32.totalorder %v1888_v17, 1 }
 0x1ca   : > { %2401 = vmatprep.subr.bf16.mxu0 %v2597_v28  ;;  %2423 = vmatprep.subr.bf16.mxu1 %v2598_v29  ;;  %v1902_v16 = vshrl.u32 %v2701_v15, %v1890_v12  ;;  %v1905_v22 = vshrl.u32 %v2702_v19, %v1890_v12  ;;  %v1893_v25 = vshrl.u32 %v2704_v24, %v1890_v12  ;;  %vm1909_vm2 = vcmp.lt.s32.totalorder %v1888_v17, 3  ;;  %v3002_v15 = vld [vmem:[%s3124_s4] sm:$0xff] }
 0x1cb   : > { %v1896_v27 = vshrl.u32 %v2705_v26, %v1890_v12  ;;  %v1898_v28 = vshll.u32 %v2705_v26, %v1889_v10  ;;  %v1899_v29 = vshrl.u32 %v2700_v13, %v1890_v12  ;;  %vm1908_vm3 = vcmp.lt.s32.totalorder %v1888_v17, 2 }
 0x1cd   : > { %2402 = vmatpush3.bf16.msra.mxu0 %v2599_v30  ;;  %2424 = vmatpush3.bf16.msra.mxu1 %v2600_v31  ;;  %v1903_v30 = vor.u32 %v1902_v16, %v1901_v14  ;;  %v1906_v31 = vor.u32 %v1905_v22, %v1904_v18  ;;  %v819_v16 = vsub.s32 3, %v2873_v62  ;;  %v808_v22 = vrot.slane %v3002_v15, %v807_v41 }
 0x1ce   : > { %2403 = vmatprep.subr.bf16.mxu0 %v2601_v32  ;;  %2425 = vmatprep.subr.bf16.mxu1 %v2602_v34  ;;  %v1882_v32 = vand.u32 8388607, %v1875_v23  ;;  %v1894_v34 = vor.u32 %v1893_v25, %v1892_v11  ;;  %v812_v11 = vrot.slane %v3002_v15, %v811_v43  ;;  %v835_v43 = vsub.s32 7, %v2873_v62 }
 0x1cf   : > { %v820_v24 = vrot.slane %v3002_v15, %v819_v16 }
 0x1d1   : > { %2404 = vmatpush3.bf16.msra.mxu0 %v2603_v35  ;;  %2426 = vmatpush3.bf16.msra.mxu1 %v2604_v36  ;;  %v1897_v35 = vor.u32 %v1896_v27, %v1895_v21  ;;  %v1900_v36 = vor.u32 %v1899_v29, %v1898_v28 }
 0x1d2   : > { %2405 = vmatprep.subr.bf16.mxu0 %v2605_v37  ;;  %2427 = vmatprep.subr.bf16.mxu1 %v2606_v38  ;;  %v1916_v37 = vsel %vm1910_vm0, %v1903_v30, 920167782  ;;  %v1920_v38 = vsel %vm1910_vm0, %v1906_v31, 1326507024 }
 0x1d3   : > { %v1917_v42 = vsel %vm1909_vm2, %v1900_v36, %v1916_v37  ;;  %v1919_v44 = vsel %vm1907_vm1, %v1897_v35, %v1900_v36  ;;  %v1921_v45 = vsel %vm1909_vm2, %v1903_v30, %v1920_v38  ;;  %v1912_v55 = vsel %vm1910_vm0, %v1900_v36, 2102212464 }
 0x1d4   : > { %v1922_v48 = vsel %vm1908_vm3, %v1919_v44, %v1921_v45  ;;  %vm2150_vm0 = vcmask (!%p2366_p11), 31744  }
 0x1d5   : > { %2406 = vmatpush3.bf16.msra.mxu0 %v2607_v39  ;;  %2428 = vmatpush3.bf16.msra.mxu1 %v2608_v40  ;;  %v1883_v39 = vor.u32 8388608, %v1882_v32  ;;  %v1915_v40 = vsel %vm1907_vm1, %v1894_v34, %v1897_v35 }
 0x1d6   : > { %2407 = vmatprep.subr.bf16.mxu0 %v2609_v51  ;;  %2429 = vmatprep.subr.bf16.mxu1 %v2610_v52  ;;  %v1918_v47 = vsel %vm1908_vm3, %v1915_v40, %v1917_v42  ;;  %v1891_v52 = vshrl.u32 %v2703_v20, %v1890_v12  ;;  %v816_v20 = vrot.slane %v3002_v15, %v815_v49  ;;  %v827_v49 = vsub.s32 5, %v2873_v62 }
 0x1d7   : > { %v1923_v46 = vshll.u32 %v1883_v39, 8 }
 0x1d9   : > { %2408 = vmatpush3.bf16.msra.mxu0 %v2611_v56  ;;  %2430 = vmatpush3.bf16.msra.mxu1 %v2612_v57  ;;  %v2982_v50 = vmul.u32.u64.low %v1923_v46, %v1918_v47  ;;  %v2983_v51 = vmul.u32.u64.high %v1923_v46, %v1918_v47, %v2982_v50  ;;  %v2985_v53 = vmul.u32.u64.low %v1923_v46, %v1922_v48  ;;  %v2986_v54 = vmul.u32.u64.high %v1923_v46, %v1922_v48, %v2985_v53 }
 0x1da   : > { %2409 = vmatprep.subr.bf16.mxu0 %v2613_v59  ;;  %2431 = vmatprep.subr.bf16.mxu1 %v2614_v60  ;;  %v1911_v56 = vsel %vm1907_vm1, %v1891_v52, %v1894_v34  ;;  %v1913_v57 = vsel %vm1909_vm2, %v1897_v35, %v1912_v55  ;;  %v828_v48 = vrot.slane %v3002_v15, %v827_v49  ;;  %v2620_v52 = vld [vmem:[%s2837_s0 + $0x180] sm:$0xff]   ;;  %v2621_v55 = vld [vmem:[%s2837_s0 + $0x148] sm:$0xff]  }
 0x1db   : > { %v1914_v58 = vsel %vm1908_vm3, %v1911_v56, %v1913_v57  ;;  %v1933_v59 = vadd.s32 1, %v2983_v51  ;;  %vm1932_vm5 = vc.u32 %v2986_v54, %v2982_v50  ;;  %v1931_v12 = vadd.s32 %v2982_v50, %v2986_v54  ;;  %v2622_v56 = vld [vmem:[%s2837_s0 + $0x1c8] sm:$0xff]  }
 0x1dc   : > { %v1930_v60 = vmul.u32 %v1923_v46, %v1914_v58  ;;  %v836_v50 = vrot.slane %v3002_v15, %v835_v43  ;;  %v2639_v49 = vld [vmem:[%s2837_s0 + $0x128] sm:$0xff]  }
 0x1dd   : > { %2410 = vmatpush3.bf16.msra.mxu0 %v2615_v0  ;;  %2432 = vmatpush3.bf16.msra.mxu1 %v2616_v1  ;;  %v1934_v61 = vsel %vm1932_vm5, %v1933_v59, %v2983_v51  ;;  %v2619_v51 = vld [vmem:[%s2837_s0 + $0x100] sm:$0xff]   ;;  %v2640_v43 = vld [vmem:[%s2837_s0 + $0x1a8] sm:$0xff]  }
 0x1de   : > { %2439 = vmatprep.subr.bf16.mxu0 %v2617_v2  ;;  %2461 = vmatprep.subr.bf16.mxu1 %v2618_v3  ;;  %v1935_v63 = vadd.s32 %v1934_v61, %v1930_v60 }
 0x1e0   : > { %v1936_v0 = vadd.s32 536870912, %v1935_v63 }
 0x1e2   : > { %v2995_v1 = vshrl.u32 %v1936_v0, 30 }
 0x1e4   : > { %v1938_v2 = vshll.u32 %v2995_v1, 30 }
 0x1e6   : > { %v1939_v3 = vsub.s32 %v1935_v63, %v1938_v2 }
 0x1e8   : > { %v1941_v5 = vsub.s32 0, %v1939_v3 }
 0x1ea   : > { %v2361_v6 = vmin.u32 %v1941_v5, %v1939_v3  ;;  %v2623_v5 = vld [vmem:[%s2837_s0 + $0x108] sm:$0xff]  }
 0x1ec   : > { %v1943_v7 = vclz %v2361_v6  ;;  %v2624_v6 = vld [vmem:[%s2837_s0 + $0x188] sm:$0xff]  }
 0x1ee   : > { %v2362_v8 = vadd.s32 4294967294, %v1943_v7 }
 0x1f0   : > { %vm2363_vm6 = vcmp.lt.s32.totalorder %v2362_v8, 0 }
 0x1f1   : > { %v1946_v9 = vsel %vm2363_vm6, 0, %v2362_v8 }
 0x1f2   : > { %v1951_v10 = vsub.s32 4294967266, %v1946_v9  ;;  %v1947_v13 = vsub.s32 32, %v1946_v9  ;;  %v1948_v17 = vshll.u32 %v1939_v3, %v1946_v9  ;;  %v2625_v9 = vld [vmem:[%s2837_s0 + $0x150] sm:$0xff]  }
 0x1f4   : > { %v1952_v14 = vadd.s32 127, %v1951_v10  ;;  %v1949_v18 = vshrl.u32 %v1931_v12, %v1947_v13  ;;  %v2626_v10 = vld [vmem:[%s2837_s0 + $0x1d0] sm:$0xff]  }
 0x1f6   : > { %v1953_v19 = vshll.u32 %v1952_v14, 23  ;;  %v1950_v21 = vor.u32 %v1949_v18, %v1948_v17  ;;  %v2627_v18 = vld [vmem:[%s2837_s0 + $0x110] sm:$0xff]  }
 0x1f8   : > { %v1954_v25 = vor.u32 4788187, %v1953_v19  ;;  %v1957_v42 = vcvt.s32.f32 %v1950_v21  ;;  %v2628_v19 = vld [vmem:[%s2837_s0 + $0x190] sm:$0xff]   ;;  %v1961_v21 = vsub.s32 4, %v2995_v1 }
 0x1fa   : > { %v1955_v40 = vand.u32 2147483647, %v1954_v25  ;;  %v2631_v25 = vld [vmem:[%s2837_s0 + $0x118] sm:$0xff]  }
 0x1fc   : > { %v1958_v57 = vmul.f32 %v1957_v42, %v1955_v40  ;;  %v2643_v40 = vld [vmem:[%s2837_s0 + $0x130] sm:$0xff]  }
 0x1fd   : > { %v2644_v42 = vld [vmem:[%s2837_s0 + $0x1b0] sm:$0xff]  }
 0x1fe   : > { %v1959_v12 = vxor.u32 2147483648, %v1958_v57 }
 0x28b   : > { %v1012_v26 = vpop.f32.mrb[0].mxu0  ;;  %v1053_v27 = vpop.f32.mrb[0].mxu1 }
 0x28c   : > { %v1013_v28 = vadd.f32 %v1012_v26, %v808_v22  ;;  %v1054_v29 = vadd.f32 %v1053_v27, %v816_v20  ;;  %v1014_v30 = vpop.f32.mrb[1].mxu0  ;;  %v1055_v31 = vpop.f32.mrb[1].mxu1  ;;  %v2629_v22 = vld [vmem:[%s2837_s0 + $0x158] sm:$0xff]   ;;  %v2633_v27 = vld [vmem:[%s2837_s0 + $0x160] sm:$0xff]  }
 0x28d   : > { %v1015_v32 = vadd.f32 %v1014_v30, %v812_v11  ;;  %v1056_v41 = vadd.f32 %v1055_v31, %v820_v24  ;;  %v1016_v34 = vpop.f32.mrb[2].mxu0  ;;  %v1057_v35 = vpop.f32.mrb[2].mxu1  ;;  %v2630_v20 = vld [vmem:[%s2837_s0 + $0x1d8] sm:$0xff]   ;;  %v1960_v24 = vsel %vm1877_vm7, %v1959_v12, %v1958_v57  ;;  %v2635_v30 = vld [vmem:[%s2837_s0 + $0x120] sm:$0xff]  }
 0x28e   : > { %v1142_v36 = vmax.f32 %v1013_v28, 0.0  ;;  %v1144_v37 = vmax.f32 %v1054_v29, 0.0  ;;  %v1017_v38 = vpop.f32.mrb[3].mxu0  ;;  %v1058_v39 = vpop.f32.mrb[3].mxu1  ;;  %v2632_v26 = vld [vmem:[%s2837_s0 + $0x198] sm:$0xff]   ;;  %v1963_v23 = vsel %vm3038_vm8, %v2968_v4, %v1960_v24  ;;  %v2634_v28 = vld [vmem:[%s2837_s0 + $0x1e0] sm:$0xff]   ;;  %v1962_v29 = vsel %vm1877_vm7, %v1961_v21, %v2995_v1 }
 0x28f   : > { %v1143_v44 = vmax.f32 %v1015_v32, 0.0  ;;  %v1145_v45 = vmax.f32 %v1056_v41, 0.0  ;;  %2649 = vcosq.f32 %v1963_v23  ;;  %v2636_v31 = vld [vmem:[%s2837_s0 + $0x1a0] sm:$0xff]   ;;  %v823_v32 = vsub.s32 4, %v2873_v62  ;;  %v2637_v34 = vld [vmem:[%s2837_s0 + $0x168] sm:$0xff]   ;;  %v2642_v38 = vld [vmem:[%s2837_s0 + $0x1f0] sm:$0xff]  }
 0x290   : > { %v1151_v53 = vpack.c.bf16 %v1142_v36, %v1142_v36  ;;  %v1153_v54 = vpack.c.bf16 %v1144_v37, %v1144_v37  ;;  %2651 = vsinq.f32 %v1963_v23  ;;  %v831_v41 = vsub.s32 6, %v2873_v62  ;;  %v2638_v35 = vld [vmem:[%s2837_s0 + $0x1e8] sm:$0xff]   ;;  %v2641_v62 = vld [vmem:[%s2837_s0 + $0x170] sm:$0xff]   ;;  %v1150_v23 = vld [vmem:[#allocation2] sm:$0xff] }
 0x291   : > { %v1152_v46 = vpack.c.bf16 %v1143_v44, %v1143_v44  ;;  %v1154_v47 = vpack.c.bf16 %v1145_v45, %v1145_v45  ;;  %v1964_v1 = vsel %vm3038_vm8, 0, %v1962_v29  ;;  %v824_v36 = vrot.slane %v3002_v15, %v823_v32 }
 0x292   : > { %v832_v37 = vrot.slane %v3002_v15, %v831_v41  ;;  %v1968_v39 = vadd.s32 3, %v1964_v1  ;;  %v2645_v15 = vld [vmem:[%s2837_s0 + $0x178] sm:$0xff]   ;;  %v2066_v41 = vld [vmem:[%s3131_s11] sm:$0xff] (!%p2366_p11)  ;;  %v2708_v1 = vmov (!%p2366_p11), 0.0|0.0  }
 0x293   : > { %v3023_v58 = vpop.f32.mrb[4].mxu0  ;;  %v3025_v59 = vpop.f32.mrb[4].mxu1  ;;  %1703 = vmatprep.mubr.bf16.mxu0 %v1152_v46  ;;  %1743 = vmatprep.mubr.bf16.mxu1 %v1154_v47  ;;  %v2646_v47 = vld [vmem:[%s2837_s0 + $0x1f8] sm:$0xff]  }
 0x294   : > { %v1096_v60 = vpop.f32.mrb[5].mxu0  ;;  %v1137_v61 = vpop.f32.mrb[5].mxu1  ;;  %1704 = vmatmul.mubr.bf16.vlgmr.msra.gmra.mrb[8].mxu0 %v1151_v53  ;;  %1744 = vmatmul.mubr.bf16.vlgmr.msra.gmra.mrb[8].mxu1 %v1153_v54  ;;  %v1095_v45 = vadd.f32 %v3023_v58, %v824_v36  ;;  %v1136_v46 = vadd.f32 %v3025_v59, %v832_v37  ;;  %v2710_v36 = vmov (!%p2366_p11), 0.0  }
 0x295   : > { %v1097_v63 = vadd.f32 %v1096_v60, %v828_v48  ;;  %v1138_v0 = vadd.f32 %v1137_v61, %v836_v50  ;;  %2440 = vmatpush3.bf16.msra.mxu0 %v2619_v51  ;;  %2462 = vmatpush3.bf16.msra.mxu1 %v2620_v52  ;;  %v1098_v2 = vpop.f32.mrb[6].mxu0  ;;  %v1139_v3 = vpop.f32.mrb[6].mxu1  ;;  %v1969_v48 = vand.u32 3, %v1968_v39  ;;  %v2647_v51 = vld [vmem:[%s2837_s0 + $0x138] sm:$0xff]   ;;  %v2706_v60 = vmov 0.0  }
 0x296   : > { %v1099_v7 = vpop.f32.mrb[7].mxu0  ;;  %v1140_v8 = vpop.f32.mrb[7].mxu1  ;;  %2441 = vmatprep.subr.bf16.mxu0 %v2621_v55  ;;  %2463 = vmatprep.subr.bf16.mxu1 %v2622_v56  ;;  %v2648_v52 = vld [vmem:[%s2837_s0 + $0x1b8] sm:$0xff]   ;;  %v1146_v54 = vmax.f32 %v1095_v45, 0.0  ;;  %v1148_v55 = vmax.f32 %v1136_v46, 0.0 }
 0x297   : > { %v1147_v13 = vmax.f32 %v1097_v63, 0.0  ;;  %v1149_v14 = vmax.f32 %v1138_v0, 0.0  ;;  %vm1974_vm9 = vcmp.eq.s32.totalorder %v1969_v48, 2  ;;  %vm1971_vm10 = vcmp.eq.s32.totalorder %v1969_v48, 0  ;;  %v1981_v61 = vld [vmem:[%s2842_s25] sm:$0x7] }
 0x298   : > { %vm1970_vm11 = vcmp.lt.s32.totalorder %v1969_v48, 2  ;;  %v1155_v58 = vpack.c.bf16 %v1146_v54, %v1146_v54  ;;  %v1157_v59 = vpack.c.bf16 %v1148_v55, %v1148_v55  ;;  %v2367_v39 = vld [vmem:[%s3132_s12] ss:$0 sm:$0xff] (!%p2366_p11) }
 0x299   : > { %v1156_v16 = vpack.c.bf16 %v1147_v13, %v1147_v13  ;;  %v1158_v17 = vpack.c.bf16 %v1149_v14, %v1149_v14  ;;  %2442 = vmatpush3.bf16.msra.mxu0 %v2623_v5  ;;  %2464 = vmatpush3.bf16.msra.mxu1 %v2624_v6  ;;  %v2650_v44 = vpop.eup %2649 }
 0x29a   : > { %2443 = vmatprep.subr.bf16.mxu0 %v2625_v9  ;;  %2465 = vmatprep.subr.bf16.mxu1 %v2626_v10  ;;  %v2652_v50 = vpop.eup %2651  ;;  %v1975_v53 = vxor.u32 2147483648, %v2650_v44 }
 0x29b   : > { %1783 = vmatprep.mubr.bf16.mxu0 %v1156_v16  ;;  %1823 = vmatprep.mubr.bf16.mxu1 %v1158_v17  ;;  %v1972_v56 = vxor.u32 2147483648, %v2652_v50 }
 0x29c   : > { %v1976_v57 = vsel %vm1974_vm9, %v1975_v53, %v2652_v50 }
 0x29d   : > { %2444 = vmatpush3.bf16.msra.mxu0 %v2627_v18  ;;  %2466 = vmatpush3.bf16.msra.mxu1 %v2628_v19  ;;  %v1973_v63 = vsel %vm1971_vm10, %v2650_v44, %v1972_v56 }
 0x29e   : > { %2445 = vmatprep.subr.bf16.mxu0 %v2629_v22  ;;  %2467 = vmatprep.subr.bf16.mxu1 %v2630_v20  ;;  %v1977_v0 = vsel %vm1970_vm11, %v1973_v63, %v1976_v57 }
 0x29f   : > { %v1978_v2 = vsel %vm1967_vm13, nan, %v1977_v0 }
 0x2a0   : > { %v1979_v3 = vsel %vm1874_vm15, %v2968_v4, %v1978_v2 }
 0x2a1   : > { %2446 = vmatpush3.bf16.msra.mxu0 %v2631_v25  ;;  %2468 = vmatpush3.bf16.msra.mxu1 %v2632_v26 }
 0x2a2   : > { %2447 = vmatprep.subr.bf16.mxu0 %v2633_v27  ;;  %2469 = vmatprep.subr.bf16.mxu1 %v2634_v28 }
 0x2a5   : > { %2448 = vmatpush3.bf16.msra.mxu0 %v2635_v30  ;;  %2470 = vmatpush3.bf16.msra.mxu1 %v2636_v31 }
 0x2a6   : > { %2449 = vmatprep.subr.bf16.mxu0 %v2637_v34  ;;  %2471 = vmatprep.subr.bf16.mxu1 %v2638_v35  ;;  %v2067_v34 = vld [vmem:[%s3131_s11 + $0x8] sm:$0xff] (!%p2366_p11)  ;;  %v2068_v35 = vld [vmem:[%s3131_s11 + $0x10] sm:$0xff] (!%p2366_p11) }
 0x2a9   : > { %2450 = vmatpush3.bf16.msra.mxu0 %v2639_v49  ;;  %2472 = vmatpush3.bf16.msra.mxu1 %v2640_v43  ;;  %v2512_v49 = vpack.c.bf16 (!%p2366_p11), %v2067_v34, %v2066_v41  ;;  %v2069_v43 = vld [vmem:[%s3131_s11 + $0x18] sm:$0xff] (!%p2366_p11) }
 0x2aa   : > { %2451 = vmatprep.subr.bf16.mxu0 %v2641_v62  ;;  %2473 = vmatprep.subr.bf16.mxu1 %v2642_v38  ;;  %v2515_v37 = vpack.c.bf16 (!%p2366_p11), %v2069_v43, %v2068_v35 }
 0x2ad   : > { %2452 = vmatpush3.bf16.msra.mxu0 %v2643_v40  ;;  %2474 = vmatpush3.bf16.msra.mxu1 %v2644_v42 }
 0x2ae   : > { %2453 = vmatprep.subr.bf16.mxu0 %v2645_v15  ;;  %2475 = vmatprep.subr.bf16.mxu1 %v2646_v47 }
 0x2b1   : > { %2454 = vmatpush3.bf16.msra.mxu0 %v2647_v51  ;;  %2476 = vmatpush3.bf16.msra.mxu1 %v2648_v52 }
 0x2b2   : > { %2495 = vmatprep.subr.mxu0 %v2706_v60 }
 0x2b4   : > { %1784 = vmatmul.mubr.bf16.vlgmr.msra.gmra.mrb[12].mxu0 %v1155_v58  ;;  %1824 = vmatmul.mubr.bf16.vlgmr.msra.gmra.mrb[12].mxu1 %v1157_v59 }
 0x2b5   : > { %2496 = vmatpush3.msk.msra.mxu0 %vm744_vm4, %v1981_v61  ;;  %2497 = vmatprep.mubr.msk.f32.mxu0 %vm2707_vm12, %v2706_v60  ;;  %vm1832_vm4 = vcmask 261120  }
 0x2b6   : > { %2511 = vmatprep.subr.bf16.mxu0 (!%p2366_p11), %v2708_v1 }
 0x2bc   : > { %2498 = vmatmul.mubr.msk.f32.vlgmr.msra.gmra.mrb[16].mxu0 %vm946_vm14, %v1979_v3  ;;  %vm2709_vm14 = vmmov (!%p2366_p11), 0  }
 0x2bd   : > { %2508 = vmatprep.mubr.msk.f32.mxu0 (!%p2366_p11), %vm2709_vm14, %v2710_v36  ;;  %2513 = vmatpush3.bf16.msra.mxu0 (!%p2366_p11), %v2512_v49 }
 0x2be   : > { %2514 = vmatprep.subr.bf16.mxu0 (!%p2366_p11), %v2708_v1 }
 0x2c1   : > { %2516 = vmatpush3.bf16.msra.mxu0 (!%p2366_p11), %v2515_v37 }
 0x367   : > { %v2411_v5 = vpop.f32.mrb[8].mxu0  ;;  %v2433_v6 = vpop.f32.mrb[8].mxu1 }
 0x368   : > { %v2412_v7 = vpop.f32.mrb[9].mxu0  ;;  %v2434_v8 = vpop.f32.mrb[9].mxu1 }
 0x369   : > { %v2413_v9 = vadd.f32 %v2412_v7, %v2411_v5  ;;  %v2435_v10 = vadd.f32 %v2434_v8, %v2433_v6  ;;  %v2414_v12 = vpop.f32.mrb[10].mxu0  ;;  %v2436_v13 = vpop.f32.mrb[10].mxu1 }
 0x36a   : > { %v2415_v14 = vpop.f32.mrb[11].mxu0  ;;  %v2437_v16 = vpop.f32.mrb[11].mxu1 }
 0x36b   : > { %v1746_v17 = vadd.f32 %v2435_v10, %v2413_v9 }
 0x387   : > { %v2455_v18 = vpop.f32.mrb[12].mxu0  ;;  %v2477_v19 = vpop.f32.mrb[12].mxu1 }
 0x388   : > { %v2456_v22 = vpop.f32.mrb[13].mxu0  ;;  %v2478_v33 = vpop.f32.mrb[13].mxu1 }
 0x389   : > { %v2457_v20 = vadd.f32 %v2456_v22, %v2455_v18  ;;  %v2479_v11 = vadd.f32 %v2478_v33, %v2477_v19  ;;  %v2458_v4 = vpop.f32.mrb[14].mxu0  ;;  %v2480_v24 = vpop.f32.mrb[14].mxu1 }
 0x38a   : > { %v2459_v21 = vpop.f32.mrb[15].mxu0  ;;  %v2481_v25 = vpop.f32.mrb[15].mxu1 }
 0x38b   : > { %v1786_v26 = vadd.f32 %v2457_v20, %v1746_v17 }
 0x38d   : > { %v1826_v27 = vadd.f32 %v2479_v11, %v1786_v26 }
 0x38f   : > { %v1831_v28 = vadd.f32 %v1826_v27, %v1150_v23  ;;  %v2054_v29 = vpop.f32.mrb[16].mxu0 }
 0x390   : > { %v2499_v30 = vpop.f32.mrb[17].mxu0 }
 0x391   : > { %1833 = vst.msk [vmem:[#allocation2] sm:$0xff] %vm1832_vm4, %v1831_v28 }
 0x395   : > { %2063 = sbr.rel (%p2366_p11) target bundleno = 1148 (0x47c), region = 121 }
 0x398   : > { %v1980_v31 = vld [vmem:[#allocation2] sm:$0xff] }
 0x399   : > { %v2058_v32 = vadd.f32 %v2054_v29, %v1980_v31 }
 0x39b   : > { %2059 = vst.msk [vmem:[#allocation2] sm:$0xff] %vm1832_vm4, %v2058_v32 }
 0x3a2   : > { %v2064_v62 = vld [vmem:[#allocation2] sm:$0xff] }
 0x3a3   : > { %v2065_v38 = vmax.f32 %v2064_v62, 0.0 }
 0x3a5   : > { %2509 = vmatmul.mubr.msk.f32.vlgmr.msra.gmra.mrb[0].mxu0 %vm1832_vm4, %v2065_v38 }
 0x478   : > { %v2146_v40 = vpop.f32.mrb[0].mxu0 }
 0x479   : > { %v2147_v42 = vadd.f32 %v2367_v39, %v2146_v40  ;;  %v2510_v44 = vpop.f32.mrb[1].mxu0 }
 0x47b   : > { %2151 = vst.msk [vmem:[%s3133_s13] sm:$0xff] %vm2150_vm0, %v2147_v42 }
 0x47c PF: > { %s3147_s15 = sld [smem:[#allocation6_spill]]  ;;  %s3148_s25 = sld [smem:[#allocation4_spill]] }
 0x47d   : > { %s3149_s26 = sld [smem:[#allocation8_spill]]  ;;  %s3150_s27 = sld [smem:[#allocation5_spill]] }
 0x47e   : > { %s3151_s28 = sld [smem:[#allocation7_spill]] }
 0x482   : > { %s23_s29 = sadd.s32 1, %s3147_s15  }
 0x483   : > { %p20_p12 = scmp.ge.s32.totalorder %s23_s29, 5  }
 0x485   :  { %22 = sbr.rel (!%p20_p12) target bundleno = 5 (0x5), region = 168 }

</bundles_post_ra>
